<compile_context>
chip_gen: v5e
topology: v5e:2x2
jax: 0.10.0
libtpu: 0.0.40
codegen_flags: <defaults>
</compile_context>

<pallas_src>
import numpy as np
import jax
import jax.numpy as jnp
from jax.experimental import pallas as pl
from jax.experimental.pallas import tpu as pltpu


def _subsample_indices(t: int, num_samples: int) -> np.ndarray:
    """Replicates torch.linspace(0, t-1, n).clamp(0, t-1).long().

    torch.linspace defaults to float32 and evaluates `i * step` in float32, so
    we do the same before clamping / truncating for parity with PyTorch.
    """
    assert num_samples > 0 and t > 0
    if num_samples == 1:
        vals = np.zeros((1,), dtype=np.float32)
    else:
        step = np.float32(t - 1) / np.float32(num_samples - 1)
        vals = np.arange(num_samples, dtype=np.float32) * step
    vals = np.clip(vals, np.float32(0), np.float32(t - 1))
    # .long() truncates toward zero; values are non-negative so this is floor.
    return vals.astype(np.int32)


def _make_gather_kernel(num_samples: int):
    def kernel(idx_ref, x_hbm, o_hbm, copy_sems):
        # idx_ref   : SMEM (num_samples,) int32 (scalar prefetch)
        # x_hbm     : raw HBM ref, shape (C, T, H*W)
        # o_hbm     : raw HBM ref, shape (C, num_samples, H*W), written via DMA
        # copy_sems : DMA semaphores, one per in-flight copy
        #
        # Issue every frame copy (HBM -> HBM) so they are all in flight...
        for i in range(num_samples):
            pltpu.make_async_copy(
                x_hbm.at[:, pl.ds(idx_ref[i], 1), :],
                o_hbm.at[:, pl.ds(i, 1), :],
                copy_sems.at[i],
            ).start()
        # ...then drain them.
        for i in range(num_samples):
            pltpu.make_async_copy(
                x_hbm.at[:, pl.ds(idx_ref[i], 1), :],
                o_hbm.at[:, pl.ds(i, 1), :],
                copy_sems.at[i],
            ).wait()

    return kernel


def uniform_temporal_subsample(x: jax.Array, num_samples: int) -> jax.Array:
    """x: (C, T, H, W) -> (C, num_samples, H, W), gathering along T (axis -3)."""
    C, T, H, W = x.shape
    HW = H * W
    indices = jnp.asarray(_subsample_indices(T, num_samples))

    # Lane-dense flatten of the spatial dims (contiguous, so the reshape is free).
    x_flat = x.reshape(C, T, HW)

    grid_spec = pltpu.PrefetchScalarGridSpec(
        num_scalar_prefetch=1,
        grid=(1,),
        in_specs=[pl.BlockSpec(memory_space=pl.ANY)],   # raw HBM ref, no auto-DMA
        out_specs=pl.BlockSpec(memory_space=pl.ANY),    # raw HBM ref, filled via DMA
        scratch_shapes=[pltpu.SemaphoreType.DMA((num_samples,))],
    )

    out_flat = pl.pallas_call(
        _make_gather_kernel(num_samples),
        out_shape=jax.ShapeDtypeStruct((C, num_samples, HW), x.dtype),
        grid_spec=grid_spec,
        compiler_params=pltpu.CompilerParams(
            dimension_semantics=("arbitrary",),
        ),
    )(indices, x_flat)

    return out_flat.reshape(C, num_samples, H, W)


class UniformTemporalSubsample:
    """Mirror of the nn.Module wrapper (no parameters)."""

    def __init__(self, num_samples: int):
        self._num_samples = num_samples

    def __call__(self, x: jax.Array) -> jax.Array:
        return uniform_temporal_subsample(x, self._num_samples)


if __name__ == "__main__":
    key = jax.random.PRNGKey(0)
    C, T, H, W = 4, 16, 16, 16
    num_samples = 8

    x = jax.random.normal(key, (C, T, H, W), dtype=jnp.float32)

    module = UniformTemporalSubsample(num_samples)
    out = jax.block_until_ready(module(x))

    # Reference check in plain JAX.
    ref_idx = _subsample_indices(T, num_samples)
    ref = jnp.take(x, jnp.asarray(ref_idx), axis=1)
    assert out.shape == (C, num_samples, H, W)
    assert out.dtype == x.dtype
    np.testing.assert_array_equal(np.asarray(out), np.asarray(ref))

    print("KERNEL_OK")
</pallas_src>

<mosaic_0001>
module attributes {stable_mosaic.version = 11 : i64} {
  func.func @kernel(%arg0: i32, %arg1: memref<8xi32, #tpu.memory_space<smem>>, %arg2: memref<4x16x256xf32, #tpu.memory_space<any>>, %arg3: memref<4x8x256xf32, #tpu.memory_space<any>>, %arg4: memref<8x!tpu.dma_semaphore, #tpu.memory_space<semaphore_mem>>) attributes {dimension_semantics = [#tpu.dimension_semantics<arbitrary>], iteration_bounds = array<i64: 1>, scalar_prefetch = 1 : i64, scratch_operands = 1 : i64, tpu.core_type = #tpu.core_type<tc>, window_params = [{}, {}]} {
    %c0 = arith.constant 0 : index
    %0 = memref.load %arg1[%c0] : memref<8xi32, #tpu.memory_space<smem>>
    %c0_i32 = arith.constant 0 : i32
    %c0_i32_0 = arith.constant 0 : i32
    %c0_i32_1 = arith.constant 0 : i32
    %1 = tpu.memref_slice %arg2[%c0_i32_0, %0, %c0_i32_1] : memref<4x16x256xf32, #tpu.memory_space<any>> -> memref<4x1x256xf32, #tpu.memory_space<any>>
    %c0_i32_2 = arith.constant 0 : i32
    %c0_i32_3 = arith.constant 0 : i32
    %c0_i32_4 = arith.constant 0 : i32
    %2 = tpu.memref_slice %arg3[%c0_i32_2, %c0_i32_3, %c0_i32_4] : memref<4x8x256xf32, #tpu.memory_space<any>> -> memref<4x1x256xf32, #tpu.memory_space<any>>
    %3 = tpu.memref_slice %arg4[%c0_i32] : memref<8x!tpu.dma_semaphore, #tpu.memory_space<semaphore_mem>> -> memref<1x!tpu.dma_semaphore, #tpu.memory_space<semaphore_mem>>
    %4 = tpu.memref_squeeze %3 : memref<1x!tpu.dma_semaphore, #tpu.memory_space<semaphore_mem>> -> memref<!tpu.dma_semaphore, #tpu.memory_space<semaphore_mem>>
    tpu.enqueue_dma source(%1 : memref<4x1x256xf32, #tpu.memory_space<any>>) target(%2 : memref<4x1x256xf32, #tpu.memory_space<any>>) target_semaphore(%4 : memref<!tpu.dma_semaphore, #tpu.memory_space<semaphore_mem>>)
    %c1 = arith.constant 1 : index
    %5 = memref.load %arg1[%c1] : memref<8xi32, #tpu.memory_space<smem>>
    %c1_i32 = arith.constant 1 : i32
    %c0_i32_5 = arith.constant 0 : i32
    %c0_i32_6 = arith.constant 0 : i32
    %6 = tpu.memref_slice %arg2[%c0_i32_5, %5, %c0_i32_6] : memref<4x16x256xf32, #tpu.memory_space<any>> -> memref<4x1x256xf32, #tpu.memory_space<any>>
    %c0_i32_7 = arith.constant 0 : i32
    %c1_i32_8 = arith.constant 1 : i32
    %c0_i32_9 = arith.constant 0 : i32
    %7 = tpu.memref_slice %arg3[%c0_i32_7, %c1_i32_8, %c0_i32_9] : memref<4x8x256xf32, #tpu.memory_space<any>> -> memref<4x1x256xf32, #tpu.memory_space<any>>
    %8 = tpu.memref_slice %arg4[%c1_i32] : memref<8x!tpu.dma_semaphore, #tpu.memory_space<semaphore_mem>> -> memref<1x!tpu.dma_semaphore, #tpu.memory_space<semaphore_mem>>
    %9 = tpu.memref_squeeze %8 : memref<1x!tpu.dma_semaphore, #tpu.memory_space<semaphore_mem>> -> memref<!tpu.dma_semaphore, #tpu.memory_space<semaphore_mem>>
    tpu.enqueue_dma source(%6 : memref<4x1x256xf32, #tpu.memory_space<any>>) target(%7 : memref<4x1x256xf32, #tpu.memory_space<any>>) target_semaphore(%9 : memref<!tpu.dma_semaphore, #tpu.memory_space<semaphore_mem>>)
    %c2 = arith.constant 2 : index
    %10 = memref.load %arg1[%c2] : memref<8xi32, #tpu.memory_space<smem>>
    %c2_i32 = arith.constant 2 : i32
    %c0_i32_10 = arith.constant 0 : i32
    %c0_i32_11 = arith.constant 0 : i32
    %11 = tpu.memref_slice %arg2[%c0_i32_10, %10, %c0_i32_11] : memref<4x16x256xf32, #tpu.memory_space<any>> -> memref<4x1x256xf32, #tpu.memory_space<any>>
    %c0_i32_12 = arith.constant 0 : i32
    %c2_i32_13 = arith.constant 2 : i32
    %c0_i32_14 = arith.constant 0 : i32
    %12 = tpu.memref_slice %arg3[%c0_i32_12, %c2_i32_13, %c0_i32_14] : memref<4x8x256xf32, #tpu.memory_space<any>> -> memref<4x1x256xf32, #tpu.memory_space<any>>
    %13 = tpu.memref_slice %arg4[%c2_i32] : memref<8x!tpu.dma_semaphore, #tpu.memory_space<semaphore_mem>> -> memref<1x!tpu.dma_semaphore, #tpu.memory_space<semaphore_mem>>
    %14 = tpu.memref_squeeze %13 : memref<1x!tpu.dma_semaphore, #tpu.memory_space<semaphore_mem>> -> memref<!tpu.dma_semaphore, #tpu.memory_space<semaphore_mem>>
    tpu.enqueue_dma source(%11 : memref<4x1x256xf32, #tpu.memory_space<any>>) target(%12 : memref<4x1x256xf32, #tpu.memory_space<any>>) target_semaphore(%14 : memref<!tpu.dma_semaphore, #tpu.memory_space<semaphore_mem>>)
    %c3 = arith.constant 3 : index
    %15 = memref.load %arg1[%c3] : memref<8xi32, #tpu.memory_space<smem>>
    %c3_i32 = arith.constant 3 : i32
    %c0_i32_15 = arith.constant 0 : i32
    %c0_i32_16 = arith.constant 0 : i32
    %16 = tpu.memref_slice %arg2[%c0_i32_15, %15, %c0_i32_16] : memref<4x16x256xf32, #tpu.memory_space<any>> -> memref<4x1x256xf32, #tpu.memory_space<any>>
    %c0_i32_17 = arith.constant 0 : i32
    %c3_i32_18 = arith.constant 3 : i32
    %c0_i32_19 = arith.constant 0 : i32
    %17 = tpu.memref_slice %arg3[%c0_i32_17, %c3_i32_18, %c0_i32_19] : memref<4x8x256xf32, #tpu.memory_space<any>> -> memref<4x1x256xf32, #tpu.memory_space<any>>
    %18 = tpu.memref_slice %arg4[%c3_i32] : memref<8x!tpu.dma_semaphore, #tpu.memory_space<semaphore_mem>> -> memref<1x!tpu.dma_semaphore, #tpu.memory_space<semaphore_mem>>
    %19 = tpu.memref_squeeze %18 : memref<1x!tpu.dma_semaphore, #tpu.memory_space<semaphore_mem>> -> memref<!tpu.dma_semaphore, #tpu.memory_space<semaphore_mem>>
    tpu.enqueue_dma source(%16 : memref<4x1x256xf32, #tpu.memory_space<any>>) target(%17 : memref<4x1x256xf32, #tpu.memory_space<any>>) target_semaphore(%19 : memref<!tpu.dma_semaphore, #tpu.memory_space<semaphore_mem>>)
    %c4 = arith.constant 4 : index
    %20 = memref.load %arg1[%c4] : memref<8xi32, #tpu.memory_space<smem>>
    %c4_i32 = arith.constant 4 : i32
    %c0_i32_20 = arith.constant 0 : i32
    %c0_i32_21 = arith.constant 0 : i32
    %21 = tpu.memref_slice %arg2[%c0_i32_20, %20, %c0_i32_21] : memref<4x16x256xf32, #tpu.memory_space<any>> -> memref<4x1x256xf32, #tpu.memory_space<any>>
    %c0_i32_22 = arith.constant 0 : i32
    %c4_i32_23 = arith.constant 4 : i32
    %c0_i32_24 = arith.constant 0 : i32
    %22 = tpu.memref_slice %arg3[%c0_i32_22, %c4_i32_23, %c0_i32_24] : memref<4x8x256xf32, #tpu.memory_space<any>> -> memref<4x1x256xf32, #tpu.memory_space<any>>
    %23 = tpu.memref_slice %arg4[%c4_i32] : memref<8x!tpu.dma_semaphore, #tpu.memory_space<semaphore_mem>> -> memref<1x!tpu.dma_semaphore, #tpu.memory_space<semaphore_mem>>
    %24 = tpu.memref_squeeze %23 : memref<1x!tpu.dma_semaphore, #tpu.memory_space<semaphore_mem>> -> memref<!tpu.dma_semaphore, #tpu.memory_space<semaphore_mem>>
    tpu.enqueue_dma source(%21 : memref<4x1x256xf32, #tpu.memory_space<any>>) target(%22 : memref<4x1x256xf32, #tpu.memory_space<any>>) target_semaphore(%24 : memref<!tpu.dma_semaphore, #tpu.memory_space<semaphore_mem>>)
    %c5 = arith.constant 5 : index
    %25 = memref.load %arg1[%c5] : memref<8xi32, #tpu.memory_space<smem>>
    %c5_i32 = arith.constant 5 : i32
    %c0_i32_25 = arith.constant 0 : i32
    %c0_i32_26 = arith.constant 0 : i32
    %26 = tpu.memref_slice %arg2[%c0_i32_25, %25, %c0_i32_26] : memref<4x16x256xf32, #tpu.memory_space<any>> -> memref<4x1x256xf32, #tpu.memory_space<any>>
    %c0_i32_27 = arith.constant 0 : i32
    %c5_i32_28 = arith.constant 5 : i32
    %c0_i32_29 = arith.constant 0 : i32
    %27 = tpu.memref_slice %arg3[%c0_i32_27, %c5_i32_28, %c0_i32_29] : memref<4x8x256xf32, #tpu.memory_space<any>> -> memref<4x1x256xf32, #tpu.memory_space<any>>
    %28 = tpu.memref_slice %arg4[%c5_i32] : memref<8x!tpu.dma_semaphore, #tpu.memory_space<semaphore_mem>> -> memref<1x!tpu.dma_semaphore, #tpu.memory_space<semaphore_mem>>
    %29 = tpu.memref_squeeze %28 : memref<1x!tpu.dma_semaphore, #tpu.memory_space<semaphore_mem>> -> memref<!tpu.dma_semaphore, #tpu.memory_space<semaphore_mem>>
    tpu.enqueue_dma source(%26 : memref<4x1x256xf32, #tpu.memory_space<any>>) target(%27 : memref<4x1x256xf32, #tpu.memory_space<any>>) target_semaphore(%29 : memref<!tpu.dma_semaphore, #tpu.memory_space<semaphore_mem>>)
    %c6 = arith.constant 6 : index
    %30 = memref.load %arg1[%c6] : memref<8xi32, #tpu.memory_space<smem>>
    %c6_i32 = arith.constant 6 : i32
    %c0_i32_30 = arith.constant 0 : i32
    %c0_i32_31 = arith.constant 0 : i32
    %31 = tpu.memref_slice %arg2[%c0_i32_30, %30, %c0_i32_31] : memref<4x16x256xf32, #tpu.memory_space<any>> -> memref<4x1x256xf32, #tpu.memory_space<any>>
    %c0_i32_32 = arith.constant 0 : i32
    %c6_i32_33 = arith.constant 6 : i32
    %c0_i32_34 = arith.constant 0 : i32
    %32 = tpu.memref_slice %arg3[%c0_i32_32, %c6_i32_33, %c0_i32_34] : memref<4x8x256xf32, #tpu.memory_space<any>> -> memref<4x1x256xf32, #tpu.memory_space<any>>
    %33 = tpu.memref_slice %arg4[%c6_i32] : memref<8x!tpu.dma_semaphore, #tpu.memory_space<semaphore_mem>> -> memref<1x!tpu.dma_semaphore, #tpu.memory_space<semaphore_mem>>
    %34 = tpu.memref_squeeze %33 : memref<1x!tpu.dma_semaphore, #tpu.memory_space<semaphore_mem>> -> memref<!tpu.dma_semaphore, #tpu.memory_space<semaphore_mem>>
    tpu.enqueue_dma source(%31 : memref<4x1x256xf32, #tpu.memory_space<any>>) target(%32 : memref<4x1x256xf32, #tpu.memory_space<any>>) target_semaphore(%34 : memref<!tpu.dma_semaphore, #tpu.memory_space<semaphore_mem>>)
    %c7 = arith.constant 7 : index
    %35 = memref.load %arg1[%c7] : memref<8xi32, #tpu.memory_space<smem>>
    %c7_i32 = arith.constant 7 : i32
    %c0_i32_35 = arith.constant 0 : i32
    %c0_i32_36 = arith.constant 0 : i32
    %36 = tpu.memref_slice %arg2[%c0_i32_35, %35, %c0_i32_36] : memref<4x16x256xf32, #tpu.memory_space<any>> -> memref<4x1x256xf32, #tpu.memory_space<any>>
    %c0_i32_37 = arith.constant 0 : i32
    %c7_i32_38 = arith.constant 7 : i32
    %c0_i32_39 = arith.constant 0 : i32
    %37 = tpu.memref_slice %arg3[%c0_i32_37, %c7_i32_38, %c0_i32_39] : memref<4x8x256xf32, #tpu.memory_space<any>> -> memref<4x1x256xf32, #tpu.memory_space<any>>
    %38 = tpu.memref_slice %arg4[%c7_i32] : memref<8x!tpu.dma_semaphore, #tpu.memory_space<semaphore_mem>> -> memref<1x!tpu.dma_semaphore, #tpu.memory_space<semaphore_mem>>
    %39 = tpu.memref_squeeze %38 : memref<1x!tpu.dma_semaphore, #tpu.memory_space<semaphore_mem>> -> memref<!tpu.dma_semaphore, #tpu.memory_space<semaphore_mem>>
    tpu.enqueue_dma source(%36 : memref<4x1x256xf32, #tpu.memory_space<any>>) target(%37 : memref<4x1x256xf32, #tpu.memory_space<any>>) target_semaphore(%39 : memref<!tpu.dma_semaphore, #tpu.memory_space<semaphore_mem>>)
    %c0_40 = arith.constant 0 : index
    %40 = memref.load %arg1[%c0_40] : memref<8xi32, #tpu.memory_space<smem>>
    %c0_i32_41 = arith.constant 0 : i32
    %c0_i32_42 = arith.constant 0 : i32
    %c0_i32_43 = arith.constant 0 : i32
    %41 = tpu.memref_slice %arg2[%c0_i32_42, %40, %c0_i32_43] : memref<4x16x256xf32, #tpu.memory_space<any>> -> memref<4x1x256xf32, #tpu.memory_space<any>>
    %c0_i32_44 = arith.constant 0 : i32
    %c0_i32_45 = arith.constant 0 : i32
    %c0_i32_46 = arith.constant 0 : i32
    %42 = tpu.memref_slice %arg3[%c0_i32_44, %c0_i32_45, %c0_i32_46] : memref<4x8x256xf32, #tpu.memory_space<any>> -> memref<4x1x256xf32, #tpu.memory_space<any>>
    %43 = tpu.memref_slice %arg4[%c0_i32_41] : memref<8x!tpu.dma_semaphore, #tpu.memory_space<semaphore_mem>> -> memref<1x!tpu.dma_semaphore, #tpu.memory_space<semaphore_mem>>
    %44 = tpu.memref_squeeze %43 : memref<1x!tpu.dma_semaphore, #tpu.memory_space<semaphore_mem>> -> memref<!tpu.dma_semaphore, #tpu.memory_space<semaphore_mem>>
    tpu.wait_dma2 semaphore(%44 : memref<!tpu.dma_semaphore, #tpu.memory_space<semaphore_mem>>) src(%41 : memref<4x1x256xf32, #tpu.memory_space<any>>) dst(%42 : memref<4x1x256xf32, #tpu.memory_space<any>>)
    %c1_47 = arith.constant 1 : index
    %45 = memref.load %arg1[%c1_47] : memref<8xi32, #tpu.memory_space<smem>>
    %c1_i32_48 = arith.constant 1 : i32
    %c0_i32_49 = arith.constant 0 : i32
    %c0_i32_50 = arith.constant 0 : i32
    %46 = tpu.memref_slice %arg2[%c0_i32_49, %45, %c0_i32_50] : memref<4x16x256xf32, #tpu.memory_space<any>> -> memref<4x1x256xf32, #tpu.memory_space<any>>
    %c0_i32_51 = arith.constant 0 : i32
    %c1_i32_52 = arith.constant 1 : i32
    %c0_i32_53 = arith.constant 0 : i32
    %47 = tpu.memref_slice %arg3[%c0_i32_51, %c1_i32_52, %c0_i32_53] : memref<4x8x256xf32, #tpu.memory_space<any>> -> memref<4x1x256xf32, #tpu.memory_space<any>>
    %48 = tpu.memref_slice %arg4[%c1_i32_48] : memref<8x!tpu.dma_semaphore, #tpu.memory_space<semaphore_mem>> -> memref<1x!tpu.dma_semaphore, #tpu.memory_space<semaphore_mem>>
    %49 = tpu.memref_squeeze %48 : memref<1x!tpu.dma_semaphore, #tpu.memory_space<semaphore_mem>> -> memref<!tpu.dma_semaphore, #tpu.memory_space<semaphore_mem>>
    tpu.wait_dma2 semaphore(%49 : memref<!tpu.dma_semaphore, #tpu.memory_space<semaphore_mem>>) src(%46 : memref<4x1x256xf32, #tpu.memory_space<any>>) dst(%47 : memref<4x1x256xf32, #tpu.memory_space<any>>)
    %c2_54 = arith.constant 2 : index
    %50 = memref.load %arg1[%c2_54] : memref<8xi32, #tpu.memory_space<smem>>
    %c2_i32_55 = arith.constant 2 : i32
    %c0_i32_56 = arith.constant 0 : i32
    %c0_i32_57 = arith.constant 0 : i32
    %51 = tpu.memref_slice %arg2[%c0_i32_56, %50, %c0_i32_57] : memref<4x16x256xf32, #tpu.memory_space<any>> -> memref<4x1x256xf32, #tpu.memory_space<any>>
    %c0_i32_58 = arith.constant 0 : i32
    %c2_i32_59 = arith.constant 2 : i32
    %c0_i32_60 = arith.constant 0 : i32
    %52 = tpu.memref_slice %arg3[%c0_i32_58, %c2_i32_59, %c0_i32_60] : memref<4x8x256xf32, #tpu.memory_space<any>> -> memref<4x1x256xf32, #tpu.memory_space<any>>
    %53 = tpu.memref_slice %arg4[%c2_i32_55] : memref<8x!tpu.dma_semaphore, #tpu.memory_space<semaphore_mem>> -> memref<1x!tpu.dma_semaphore, #tpu.memory_space<semaphore_mem>>
    %54 = tpu.memref_squeeze %53 : memref<1x!tpu.dma_semaphore, #tpu.memory_space<semaphore_mem>> -> memref<!tpu.dma_semaphore, #tpu.memory_space<semaphore_mem>>
    tpu.wait_dma2 semaphore(%54 : memref<!tpu.dma_semaphore, #tpu.memory_space<semaphore_mem>>) src(%51 : memref<4x1x256xf32, #tpu.memory_space<any>>) dst(%52 : memref<4x1x256xf32, #tpu.memory_space<any>>)
    %c3_61 = arith.constant 3 : index
    %55 = memref.load %arg1[%c3_61] : memref<8xi32, #tpu.memory_space<smem>>
    %c3_i32_62 = arith.constant 3 : i32
    %c0_i32_63 = arith.constant 0 : i32
    %c0_i32_64 = arith.constant 0 : i32
    %56 = tpu.memref_slice %arg2[%c0_i32_63, %55, %c0_i32_64] : memref<4x16x256xf32, #tpu.memory_space<any>> -> memref<4x1x256xf32, #tpu.memory_space<any>>
    %c0_i32_65 = arith.constant 0 : i32
    %c3_i32_66 = arith.constant 3 : i32
    %c0_i32_67 = arith.constant 0 : i32
    %57 = tpu.memref_slice %arg3[%c0_i32_65, %c3_i32_66, %c0_i32_67] : memref<4x8x256xf32, #tpu.memory_space<any>> -> memref<4x1x256xf32, #tpu.memory_space<any>>
    %58 = tpu.memref_slice %arg4[%c3_i32_62] : memref<8x!tpu.dma_semaphore, #tpu.memory_space<semaphore_mem>> -> memref<1x!tpu.dma_semaphore, #tpu.memory_space<semaphore_mem>>
    %59 = tpu.memref_squeeze %58 : memref<1x!tpu.dma_semaphore, #tpu.memory_space<semaphore_mem>> -> memref<!tpu.dma_semaphore, #tpu.memory_space<semaphore_mem>>
    tpu.wait_dma2 semaphore(%59 : memref<!tpu.dma_semaphore, #tpu.memory_space<semaphore_mem>>) src(%56 : memref<4x1x256xf32, #tpu.memory_space<any>>) dst(%57 : memref<4x1x256xf32, #tpu.memory_space<any>>)
    %c4_68 = arith.constant 4 : index
    %60 = memref.load %arg1[%c4_68] : memref<8xi32, #tpu.memory_space<smem>>
    %c4_i32_69 = arith.constant 4 : i32
    %c0_i32_70 = arith.constant 0 : i32
    %c0_i32_71 = arith.constant 0 : i32
    %61 = tpu.memref_slice %arg2[%c0_i32_70, %60, %c0_i32_71] : memref<4x16x256xf32, #tpu.memory_space<any>> -> memref<4x1x256xf32, #tpu.memory_space<any>>
    %c0_i32_72 = arith.constant 0 : i32
    %c4_i32_73 = arith.constant 4 : i32
    %c0_i32_74 = arith.constant 0 : i32
    %62 = tpu.memref_slice %arg3[%c0_i32_72, %c4_i32_73, %c0_i32_74] : memref<4x8x256xf32, #tpu.memory_space<any>> -> memref<4x1x256xf32, #tpu.memory_space<any>>
    %63 = tpu.memref_slice %arg4[%c4_i32_69] : memref<8x!tpu.dma_semaphore, #tpu.memory_space<semaphore_mem>> -> memref<1x!tpu.dma_semaphore, #tpu.memory_space<semaphore_mem>>
    %64 = tpu.memref_squeeze %63 : memref<1x!tpu.dma_semaphore, #tpu.memory_space<semaphore_mem>> -> memref<!tpu.dma_semaphore, #tpu.memory_space<semaphore_mem>>
    tpu.wait_dma2 semaphore(%64 : memref<!tpu.dma_semaphore, #tpu.memory_space<semaphore_mem>>) src(%61 : memref<4x1x256xf32, #tpu.memory_space<any>>) dst(%62 : memref<4x1x256xf32, #tpu.memory_space<any>>)
    %c5_75 = arith.constant 5 : index
    %65 = memref.load %arg1[%c5_75] : memref<8xi32, #tpu.memory_space<smem>>
    %c5_i32_76 = arith.constant 5 : i32
    %c0_i32_77 = arith.constant 0 : i32
    %c0_i32_78 = arith.constant 0 : i32
    %66 = tpu.memref_slice %arg2[%c0_i32_77, %65, %c0_i32_78] : memref<4x16x256xf32, #tpu.memory_space<any>> -> memref<4x1x256xf32, #tpu.memory_space<any>>
    %c0_i32_79 = arith.constant 0 : i32
    %c5_i32_80 = arith.constant 5 : i32
    %c0_i32_81 = arith.constant 0 : i32
    %67 = tpu.memref_slice %arg3[%c0_i32_79, %c5_i32_80, %c0_i32_81] : memref<4x8x256xf32, #tpu.memory_space<any>> -> memref<4x1x256xf32, #tpu.memory_space<any>>
    %68 = tpu.memref_slice %arg4[%c5_i32_76] : memref<8x!tpu.dma_semaphore, #tpu.memory_space<semaphore_mem>> -> memref<1x!tpu.dma_semaphore, #tpu.memory_space<semaphore_mem>>
    %69 = tpu.memref_squeeze %68 : memref<1x!tpu.dma_semaphore, #tpu.memory_space<semaphore_mem>> -> memref<!tpu.dma_semaphore, #tpu.memory_space<semaphore_mem>>
    tpu.wait_dma2 semaphore(%69 : memref<!tpu.dma_semaphore, #tpu.memory_space<semaphore_mem>>) src(%66 : memref<4x1x256xf32, #tpu.memory_space<any>>) dst(%67 : memref<4x1x256xf32, #tpu.memory_space<any>>)
    %c6_82 = arith.constant 6 : index
    %70 = memref.load %arg1[%c6_82] : memref<8xi32, #tpu.memory_space<smem>>
    %c6_i32_83 = arith.constant 6 : i32
    %c0_i32_84 = arith.constant 0 : i32
    %c0_i32_85 = arith.constant 0 : i32
    %71 = tpu.memref_slice %arg2[%c0_i32_84, %70, %c0_i32_85] : memref<4x16x256xf32, #tpu.memory_space<any>> -> memref<4x1x256xf32, #tpu.memory_space<any>>
    %c0_i32_86 = arith.constant 0 : i32
    %c6_i32_87 = arith.constant 6 : i32
    %c0_i32_88 = arith.constant 0 : i32
    %72 = tpu.memref_slice %arg3[%c0_i32_86, %c6_i32_87, %c0_i32_88] : memref<4x8x256xf32, #tpu.memory_space<any>> -> memref<4x1x256xf32, #tpu.memory_space<any>>
    %73 = tpu.memref_slice %arg4[%c6_i32_83] : memref<8x!tpu.dma_semaphore, #tpu.memory_space<semaphore_mem>> -> memref<1x!tpu.dma_semaphore, #tpu.memory_space<semaphore_mem>>
    %74 = tpu.memref_squeeze %73 : memref<1x!tpu.dma_semaphore, #tpu.memory_space<semaphore_mem>> -> memref<!tpu.dma_semaphore, #tpu.memory_space<semaphore_mem>>
    tpu.wait_dma2 semaphore(%74 : memref<!tpu.dma_semaphore, #tpu.memory_space<semaphore_mem>>) src(%71 : memref<4x1x256xf32, #tpu.memory_space<any>>) dst(%72 : memref<4x1x256xf32, #tpu.memory_space<any>>)
    %c7_89 = arith.constant 7 : index
    %75 = memref.load %arg1[%c7_89] : memref<8xi32, #tpu.memory_space<smem>>
    %c7_i32_90 = arith.constant 7 : i32
    %c0_i32_91 = arith.constant 0 : i32
    %c0_i32_92 = arith.constant 0 : i32
    %76 = tpu.memref_slice %arg2[%c0_i32_91, %75, %c0_i32_92] : memref<4x16x256xf32, #tpu.memory_space<any>> -> memref<4x1x256xf32, #tpu.memory_space<any>>
    %c0_i32_93 = arith.constant 0 : i32
    %c7_i32_94 = arith.constant 7 : i32
    %c0_i32_95 = arith.constant 0 : i32
    %77 = tpu.memref_slice %arg3[%c0_i32_93, %c7_i32_94, %c0_i32_95] : memref<4x8x256xf32, #tpu.memory_space<any>> -> memref<4x1x256xf32, #tpu.memory_space<any>>
    %78 = tpu.memref_slice %arg4[%c7_i32_90] : memref<8x!tpu.dma_semaphore, #tpu.memory_space<semaphore_mem>> -> memref<1x!tpu.dma_semaphore, #tpu.memory_space<semaphore_mem>>
    %79 = tpu.memref_squeeze %78 : memref<1x!tpu.dma_semaphore, #tpu.memory_space<semaphore_mem>> -> memref<!tpu.dma_semaphore, #tpu.memory_space<semaphore_mem>>
    tpu.wait_dma2 semaphore(%79 : memref<!tpu.dma_semaphore, #tpu.memory_space<semaphore_mem>>) src(%76 : memref<4x1x256xf32, #tpu.memory_space<any>>) dst(%77 : memref<4x1x256xf32, #tpu.memory_space<any>>)
    return
  }
}

</mosaic_0001>

<bundles_post_ra>
// kernel: tpu_custom_call.1
= control target key start
LH: loop header
LB: loop body
LE: loop exit
PB: predicated region body
PF: predicated region fallthrough
CT: control target
= control target key end

     0   :  { %s466_s12 = smov [#allocation4]   ;;  %s611_s0 = inlined_call_operand.hbm [shape: s32[8], index: 0, kind: input, shape index: {}]   ;;  %s612_s1 = inlined_call_operand.hbm [shape: f32[4,16,256], index: 1, kind: input, shape index: {}]   ;;  %s613_s2 = inlined_call_operand.hbm [shape: f32[4,8,256], index: 2, kind: output, shape index: {}]  }
   0x1   :  { %s8_s11 = sshll.u32 %s611_s0, 4  ;;  %s9_s11 = int_to_ptr.hbm [resolvable:$true] %s8_s11 }
   0x2   :  { %11 = dma.hbm_to_smem %s9_s11, 16, %s466_s12, [#allocation3] }
   0x3   :  { %448 = dma.done.wait [#allocation3], 16 }
   0x4   :  { %449 = vsyncadd [#allocation3], 4294967280 }
   0x5   :  { %14 = sfence }
   0x6   :  { %s15_s13 = sld [smem:[#allocation4]]  ;;  %s27_s16 = sshll.u32 %s613_s2, 4  ;;  %s28_s16 = int_to_ptr.hbm [resolvable:$true] %s27_s16 }
   0x7   :  { %s467_s17 = smov 512   ;;  %s468_s18 = smov 256  }
   0x8   :  { %34 = sst [smem:[#allocation6]] %s467_s17  ;;  %s469_s19 = smov 2  }
   0x9   :  { %36 = sst [smem:[#allocation6 + $0x1]] %s468_s18  ;;  %s470_s0 = smov 128  }
   0xa   :  { %38 = sst [smem:[#allocation6 + $0x2]] %s469_s19  ;;  %s471_s24 = smov 1  }
   0xb   :  { %40 = sst [smem:[#allocation6 + $0x3]] %s470_s0  ;;  %s472_s29 = smov [#allocation2]  }
   0xc   :  { %s16_s20 = sshrl.u32 %s15_s13, 3  ;;  %s17_s21 = sand.u32 7, %s15_s13  }
   0xd   :  { %s390_s22 = sshll.u32 %s16_s20, 4  ;;  %42 = sst [smem:[#allocation6 + $0x4]] %s470_s0 }
   0xe   :  { %s19_s23 = sadd.s32 %s390_s22, %s17_s21  ;;  %44 = sst [smem:[#allocation6 + $0x5]] %s471_s24 }
   0xf   :  { %s20_s27 = scalar_lea.hbm %s612_s1, %s19_s23  ;;  %s473_s30 = smov [#allocation5]  }
  0x10   :  { %s25_s28 = sshll.u32 %s20_s27, 4  ;;  %s474_s3 = smov 0   ;;  %s26_s28 = int_to_ptr.hbm [resolvable:$true] %s25_s28 }
  0x11   :  { %46 = dma.general %s26_s28, 128, %s28_s16, %s472_s29, %s473_s30, [#allocation6], %s474_s3, 0  }
  0x12   :  { %s391_s4 = sld [smem:[#allocation4 + $0x1]]  ;;  %s53_s7 = scalar_lea.hbm %s613_s2, 1 }
  0x13   :  { %68 = sst [smem:[#allocation8]] %s467_s17  ;;  %s61_s8 = sshll.u32 %s53_s7, 4  ;;  %s62_s8 = int_to_ptr.hbm [resolvable:$true] %s61_s8 }
  0x14   :  { %70 = sst [smem:[#allocation8 + $0x1]] %s468_s18  ;;  %s87_s22 = scalar_lea.hbm %s613_s2, 2 }
  0x15   :  { %72 = sst [smem:[#allocation8 + $0x2]] %s469_s19  ;;  %s475_s23 = smov [#allocation2 + $0x1]  }
  0x16   :  { %74 = sst [smem:[#allocation8 + $0x3]] %s470_s0  ;;  %s476_s25 = smov [#allocation7]  }
  0x17   :  { %76 = sst [smem:[#allocation8 + $0x4]] %s470_s0  ;;  %s95_s27 = sshll.u32 %s87_s22, 4  ;;  %s96_s27 = int_to_ptr.hbm [resolvable:$true] %s95_s27 }
  0x18   :  { %s48_s9 = sshrl.u32 %s391_s4, 3  ;;  %s49_s10 = sand.u32 7, %s391_s4  }
  0x19   :  { %s392_s11 = sshll.u32 %s48_s9, 4  ;;  %78 = sst [smem:[#allocation8 + $0x5]] %s471_s24 }
  0x1a   :  { %s51_s12 = sadd.s32 %s392_s11, %s49_s10  ;;  %s121_s11 = scalar_lea.hbm %s613_s2, 3 }
  0x1b   :  { %s52_s15 = scalar_lea.hbm %s612_s1, %s51_s12  ;;  %s477_s12 = smov [#allocation2 + $0x2]  }
  0x1c   :  { %s59_s16 = sshll.u32 %s52_s15, 4  ;;  %s478_s13 = smov [#allocation9]   ;;  %s60_s16 = int_to_ptr.hbm [resolvable:$true] %s59_s16 }
  0x1d   :  { %80 = dma.general %s60_s16, 128, %s62_s8, %s475_s23, %s476_s25, [#allocation8], %s474_s3, 0  }
  0x1e   :  { %s393_s26 = sld [smem:[#allocation4 + $0x2]]  ;;  %s129_s15 = sshll.u32 %s121_s11, 4  ;;  %s130_s15 = int_to_ptr.hbm [resolvable:$true] %s129_s15 }
  0x1f   :  { %102 = sst [smem:[#allocation10]] %s467_s17  ;;  %s480_s5 = smov [#allocation11]  }
  0x20   :  { %104 = sst [smem:[#allocation10 + $0x1]] %s468_s18  ;;  %s482_s23 = smov [#allocation13]  }
  0x21   :  { %106 = sst [smem:[#allocation10 + $0x2]] %s469_s19 }
  0x22   :  { %108 = sst [smem:[#allocation10 + $0x3]] %s470_s0 }
  0x23   :  { %110 = sst [smem:[#allocation10 + $0x4]] %s470_s0 }
  0x24   :  { %s82_s28 = sshrl.u32 %s393_s26, 3  ;;  %s83_s29 = sand.u32 7, %s393_s26  }
  0x25   :  { %s394_s30 = sshll.u32 %s82_s28, 4  ;;  %112 = sst [smem:[#allocation10 + $0x5]] %s471_s24 }
  0x26   :  { %s85_s4 = sadd.s32 %s394_s30, %s83_s29  ;;  %s155_s30 = scalar_lea.hbm %s613_s2, 4 }
  0x27   :  { %s86_s7 = scalar_lea.hbm %s612_s1, %s85_s4  ;;  %s479_s4 = smov [#allocation2 + $0x3]  }
  0x28   :  { %s93_s8 = sshll.u32 %s86_s7, 4  ;;  %s163_s7 = sshll.u32 %s155_s30, 4  ;;  %s94_s8 = int_to_ptr.hbm [resolvable:$true] %s93_s8  ;;  %s164_s7 = int_to_ptr.hbm [resolvable:$true] %s163_s7 }
  0x29   :  { %114 = dma.general %s94_s8, 128, %s96_s27, %s477_s12, %s478_s13, [#allocation10], %s474_s3, 0  }
  0x2a   :  { %s395_s14 = sld [smem:[#allocation4 + $0x3]]  ;;  %s484_s12 = smov [#allocation15]  }
  0x2b   :  { %136 = sst [smem:[#allocation12]] %s467_s17 }
  0x2c   :  { %138 = sst [smem:[#allocation12 + $0x1]] %s468_s18 }
  0x2d   :  { %140 = sst [smem:[#allocation12 + $0x2]] %s469_s19 }
  0x2e   :  { %142 = sst [smem:[#allocation12 + $0x3]] %s470_s0 }
  0x2f   :  { %144 = sst [smem:[#allocation12 + $0x4]] %s470_s0 }
  0x30   :  { %s116_s16 = sshrl.u32 %s395_s14, 3  ;;  %s117_s20 = sand.u32 7, %s395_s14  }
  0x31   :  { %s396_s21 = sshll.u32 %s116_s16, 4  ;;  %146 = sst [smem:[#allocation12 + $0x5]] %s471_s24 }
  0x32   :  { %s119_s22 = sadd.s32 %s396_s21, %s117_s20  ;;  %s189_s21 = scalar_lea.hbm %s613_s2, 5 }
  0x33   :  { %s120_s26 = scalar_lea.hbm %s612_s1, %s119_s22  ;;  %s481_s22 = smov [#allocation2 + $0x4]  }
  0x34   :  { %s127_s27 = sshll.u32 %s120_s26, 4  ;;  %s197_s26 = sshll.u32 %s189_s21, 4  ;;  %s128_s27 = int_to_ptr.hbm [resolvable:$true] %s127_s27  ;;  %s198_s26 = int_to_ptr.hbm [resolvable:$true] %s197_s26 }
  0x35   :  { %148 = dma.general %s128_s27, 128, %s130_s15, %s479_s4, %s480_s5, [#allocation12], %s474_s3, 0  }
  0x36   :  { %s397_s6 = sld [smem:[#allocation4 + $0x4]]  ;;  %s486_s4 = smov [#allocation17]  }
  0x37   :  { %170 = sst [smem:[#allocation14]] %s467_s17 }
  0x38   :  { %172 = sst [smem:[#allocation14 + $0x1]] %s468_s18 }
  0x39   :  { %174 = sst [smem:[#allocation14 + $0x2]] %s469_s19 }
  0x3a   :  { %176 = sst [smem:[#allocation14 + $0x3]] %s470_s0 }
  0x3b   :  { %178 = sst [smem:[#allocation14 + $0x4]] %s470_s0 }
  0x3c   :  { %s150_s8 = sshrl.u32 %s397_s6, 3  ;;  %s151_s9 = sand.u32 7, %s397_s6  }
  0x3d   :  { %s398_s10 = sshll.u32 %s150_s8, 4  ;;  %180 = sst [smem:[#allocation14 + $0x5]] %s471_s24 }
  0x3e   :  { %s153_s11 = sadd.s32 %s398_s10, %s151_s9  ;;  %s223_s10 = scalar_lea.hbm %s613_s2, 6 }
  0x3f   :  { %s154_s14 = scalar_lea.hbm %s612_s1, %s153_s11  ;;  %s483_s11 = smov [#allocation2 + $0x5]  }
  0x40   :  { %s161_s15 = sshll.u32 %s154_s14, 4  ;;  %s231_s14 = sshll.u32 %s223_s10, 4  ;;  %s162_s15 = int_to_ptr.hbm [resolvable:$true] %s161_s15  ;;  %s232_s14 = int_to_ptr.hbm [resolvable:$true] %s231_s14 }
  0x41   :  { %182 = dma.general %s162_s15, 128, %s164_s7, %s481_s22, %s482_s23, [#allocation14], %s474_s3, 0  }
  0x42   :  { %s399_s25 = sld [smem:[#allocation4 + $0x5]] }
  0x43   :  { %204 = sst [smem:[#allocation16]] %s467_s17 }
  0x44   :  { %206 = sst [smem:[#allocation16 + $0x1]] %s468_s18 }
  0x45   :  { %208 = sst [smem:[#allocation16 + $0x2]] %s469_s19 }
  0x46   :  { %210 = sst [smem:[#allocation16 + $0x3]] %s470_s0 }
  0x47   :  { %212 = sst [smem:[#allocation16 + $0x4]] %s470_s0 }
  0x48   :  { %s184_s27 = sshrl.u32 %s399_s25, 3  ;;  %s185_s28 = sand.u32 7, %s399_s25  }
  0x49   :  { %s400_s29 = sshll.u32 %s184_s27, 4  ;;  %214 = sst [smem:[#allocation16 + $0x5]] %s471_s24 }
  0x4a   :  { %s187_s30 = sadd.s32 %s400_s29, %s185_s28  ;;  %s257_s29 = scalar_lea.hbm %s613_s2, 7 }
  0x4b   :  { %s188_s6 = scalar_lea.hbm %s612_s1, %s187_s30  ;;  %s485_s30 = smov [#allocation2 + $0x6]  }
  0x4c   :  { %s195_s7 = sshll.u32 %s188_s6, 4  ;;  %s265_s6 = sshll.u32 %s257_s29, 4  ;;  %s196_s7 = int_to_ptr.hbm [resolvable:$true] %s195_s7  ;;  %s266_s6 = int_to_ptr.hbm [resolvable:$true] %s265_s6 }
  0x4d   :  { %216 = dma.general %s196_s7, 128, %s198_s26, %s483_s11, %s484_s12, [#allocation16], %s474_s3, 0  }
  0x4e   :  { %s401_s13 = sld [smem:[#allocation4 + $0x6]] }
  0x4f   :  { %238 = sst [smem:[#allocation18]] %s467_s17 }
  0x50   :  { %240 = sst [smem:[#allocation18 + $0x1]] %s468_s18 }
  0x51   :  { %242 = sst [smem:[#allocation18 + $0x2]] %s469_s19 }
  0x52   :  { %244 = sst [smem:[#allocation18 + $0x3]] %s470_s0 }
  0x53   :  { %246 = sst [smem:[#allocation18 + $0x4]] %s470_s0 }
  0x54   :  { %s218_s15 = sshrl.u32 %s401_s13, 3  ;;  %s219_s16 = sand.u32 7, %s401_s13  }
  0x55   :  { %s402_s20 = sshll.u32 %s218_s15, 4  ;;  %248 = sst [smem:[#allocation18 + $0x5]] %s471_s24 }
  0x56   :  { %s221_s21 = sadd.s32 %s402_s20, %s219_s16  ;;  %s488_s13 = smov [#allocation19]  }
  0x57   :  { %s222_s25 = scalar_lea.hbm %s612_s1, %s221_s21 }
  0x58   :  { %s229_s26 = sshll.u32 %s222_s25, 4  ;;  %s230_s26 = int_to_ptr.hbm [resolvable:$true] %s229_s26 }
  0x59   :  { %250 = dma.general %s230_s26, 128, %s232_s14, %s485_s30, %s486_s4, [#allocation18], %s474_s3, 0  }
  0x5a   :  { %s403_s5 = sld [smem:[#allocation4 + $0x7]] }
  0x5b   :  { %272 = sst [smem:[#allocation20]] %s467_s17 }
  0x5c   :  { %274 = sst [smem:[#allocation20 + $0x1]] %s468_s18  ;;  %s487_s18 = smov [#allocation2 + $0x7]  }
  0x5d   :  { %276 = sst [smem:[#allocation20 + $0x2]] %s469_s19 }
  0x5e   :  { %278 = sst [smem:[#allocation20 + $0x3]] %s470_s0 }
  0x5f   :  { %280 = sst [smem:[#allocation20 + $0x4]] %s470_s0 }
  0x60   :  { %s252_s7 = sshrl.u32 %s403_s5, 3  ;;  %s253_s8 = sand.u32 7, %s403_s5  }
  0x61   :  { %s404_s2 = sshll.u32 %s252_s7, 4  ;;  %282 = sst [smem:[#allocation20 + $0x5]] %s471_s24 }
  0x62   :  { %s255_s9 = sadd.s32 %s404_s2, %s253_s8 }
  0x63   :  { %s256_s17 = scalar_lea.hbm %s612_s1, %s255_s9 }
  0x64   :  { %s263_s12 = sshll.u32 %s256_s17, 4  ;;  %s264_s12 = int_to_ptr.hbm [resolvable:$true] %s263_s12 }
  0x65   :  { %284 = dma.general %s264_s12, 128, %s266_s6, %s487_s18, %s488_s13, [#allocation20], %s474_s3, 0  }
  0x66   :  { %450 = dma.done.wait [#allocation2], 128 }
  0x67   :  { %451 = vsyncadd [#allocation2], 4294967168 }
  0x68   :  { %452 = dma.done.wait [#allocation2 + $0x1], 128 }
  0x69   :  { %453 = vsyncadd [#allocation2 + $0x1], 4294967168 }
  0x6a   :  { %454 = dma.done.wait [#allocation2 + $0x2], 128 }
  0x6b   :  { %455 = vsyncadd [#allocation2 + $0x2], 4294967168 }
  0x6c   :  { %456 = dma.done.wait [#allocation2 + $0x3], 128 }
  0x6d   :  { %457 = vsyncadd [#allocation2 + $0x3], 4294967168 }
  0x6e   :  { %458 = dma.done.wait [#allocation2 + $0x4], 128 }
  0x6f   :  { %459 = vsyncadd [#allocation2 + $0x4], 4294967168 }
  0x70   :  { %460 = dma.done.wait [#allocation2 + $0x5], 128 }
  0x71   :  { %461 = vsyncadd [#allocation2 + $0x5], 4294967168 }
  0x72   :  { %462 = dma.done.wait [#allocation2 + $0x6], 128 }
  0x73   :  { %463 = vsyncadd [#allocation2 + $0x6], 4294967168 }
  0x74   :  { %464 = dma.done.wait [#allocation2 + $0x7], 128 }
  0x75   :  { %465 = vsyncadd [#allocation2 + $0x7], 4294967168 }
  0x76   :  { %311 = vsyncmov [#allocation2] }
  0x79   :  { %s312_s1 = vpop.sfrf %311 }
  0x7a   :  { %p405_p0 = scmp.ne.s32.totalorder %s312_s1, 0 }
  0x7c   :  { %316 = shalt.err (%p405_p0)  }
  0x7d   :  { %318 = vsyncmov [#allocation2 + $0x1] }
  0x80   :  { %s319_s19 = vpop.sfrf %318 }
  0x81   :  { %p406_p1 = scmp.ne.s32.totalorder %s319_s19, 0 }
  0x83   :  { %323 = shalt.err (%p406_p1)  }
  0x84   :  { %325 = vsyncmov [#allocation2 + $0x2] }
  0x87   :  { %s326_s0 = vpop.sfrf %325 }
  0x88   :  { %p407_p2 = scmp.ne.s32.totalorder %s326_s0, 0 }
  0x8a   :  { %330 = shalt.err (%p407_p2)  }
  0x8b   :  { %332 = vsyncmov [#allocation2 + $0x3] }
  0x8e   :  { %s333_s24 = vpop.sfrf %332 }
  0x8f   :  { %p408_p3 = scmp.ne.s32.totalorder %s333_s24, 0 }
  0x91   :  { %337 = shalt.err (%p408_p3)  }
  0x92   :  { %339 = vsyncmov [#allocation2 + $0x4] }
  0x95   :  { %s340_s3 = vpop.sfrf %339 }
  0x96   :  { %p409_p4 = scmp.ne.s32.totalorder %s340_s3, 0 }
  0x98   :  { %344 = shalt.err (%p409_p4)  }
  0x99   :  { %346 = vsyncmov [#allocation2 + $0x5] }
  0x9c   :  { %s347_s14 = vpop.sfrf %346 }
  0x9d   :  { %p410_p5 = scmp.ne.s32.totalorder %s347_s14, 0 }
  0x9f   :  { %351 = shalt.err (%p410_p5)  }
  0xa0   :  { %353 = vsyncmov [#allocation2 + $0x6] }
  0xa3   :  { %s354_s15 = vpop.sfrf %353 }
  0xa4   :  { %p411_p6 = scmp.ne.s32.totalorder %s354_s15, 0 }
  0xa6   :  { %358 = shalt.err (%p411_p6)  }
  0xa7   :  { %360 = vsyncmov [#allocation2 + $0x7] }
  0xaa   :  { %s361_s16 = vpop.sfrf %360 }
  0xab   :  { %p412_p7 = scmp.ne.s32.totalorder %s361_s16, 0 }
  0xad   :  { %365 = shalt.err (%p412_p7)  }

</bundles_post_ra>
